<compile_context>
chip_gen: v7x
topology: tpu7x:2x2x1
jax: 0.10.0
libtpu: 0.0.40
codegen_flags: <defaults>
</compile_context>

<pallas_src>
import functools
import math

import jax
import jax.numpy as jnp
import numpy as np
from jax.experimental import pallas as pl
from jax.experimental.pallas import tpu as pltpu


def article_encoder_kernel(emb_ref, mask_ref, convw_ref, convb_ref,
                           pw_ref, pb_ref, ctx_ref, out_ref,
                           *, H, L, W, E, CP, approx_recip):
    # emb_ref : (1, H, L+W-1, E)  'same'-padded word embeddings (compute dtype)
    # mask_ref: (1, H, L)         token mask (1.0 keep / 0.0 mask), f32
    # convw_ref: (W, E, CP)       conv taps, output channels zero-padded C -> CP
    # convb_ref: (1, CP) f32; pw_ref: (CP, E); pb_ref: (1, E) f32; ctx_ref: (1, E) f32
    # out_ref : (1, H, CP) f32    article vectors (lanes C..CP are exactly zero)
    x = emb_ref[0]                                           # (H, L+W-1, E)

    # ---- Conv1d('same') + bias + ReLU: W accumulating tap matmuls on the MXU ----
    acc = jnp.zeros((H * L, CP), jnp.float32)
    for w in range(W):                                       # static, W is small
        x_w = x[:, w:w + L, :].reshape(H * L, E)             # sublane-shifted view
        acc = acc + jnp.dot(x_w, convw_ref[w],
                            preferred_element_type=jnp.float32)
    conv = jnp.maximum(acc + convb_ref[0], 0.0)              # (H*L, CP) f32

    # ---- Additive attention: projection (MXU) + tanh + context score ----
    proj = jnp.dot(conv.astype(pw_ref.dtype), pw_ref[...],
                   preferred_element_type=jnp.float32)
    proj = jnp.tanh(proj + pb_ref[0])                        # (H*L, E) f32
    scores = jnp.sum(proj * ctx_ref[...], axis=-1).reshape(H, L)

    # ---- Masked softmax over the *history* axis (PyTorch softmax(dim=1)) ----
    m = mask_ref[0]
    scores = jnp.where(m > 0.5, scores, -1000000000.0)
    smax = jnp.max(scores, axis=0, keepdims=True)            # (1, L), reduce over H
    ex = jnp.exp(scores - smax)
    denom = jnp.sum(ex, axis=0, keepdims=True)
    if approx_recip:
        attn = ex * pl.reciprocal(denom, approx=True)        # EUP slot
    else:
        attn = ex / denom                                    # exact path (validation)

    # ---- Weighted sum over article tokens + ReLU (dropout = identity, eval) ----
    conv3 = conv.reshape(H, L, CP)
    weighted = jnp.sum(conv3 * attn[..., None], axis=1)      # (H, CP)
    out_ref[0] = jnp.maximum(weighted, 0.0).astype(out_ref.dtype)


def article_encoder_forward(ids, cat_ids, subcat_ids, mask,
                            word_table, cat_table, subcat_table,
                            convw, convb, pw, pb, ctx, *,
                            window_size, compute_dtype=jnp.bfloat16,
                            approx_recip=True):
    """ids: (B, H, L, 1) int32; cat_ids/subcat_ids: (B, H); mask: (B, H, L) f32.

    compute_dtype: dtype of the MXU matmul operands (bf16 default — MXU-native on
    v5e/v6e/v7x and halves DMA bytes of the big input).  Accumulation is always f32.
    approx_recip: use the EUP approximate reciprocal for the softmax denominator;
    set False to match the reference division exactly.
    """
    B, H, L, _ = ids.shape
    E = word_table.shape[1]
    W = window_size
    C = convw.shape[-1]
    Lp = L + W - 1
    CP = ((C + 127) // 128) * 128                 # lane-padded conv output channels

    # --- Glue: embedding gathers (padding_idx=0 rows are zeroed in the tables) ---
    word_emb = word_table[ids[..., 0]]            # (B, H, L, E)
    cat_emb = cat_table[cat_ids]                  # (B, H, E)  pass-through
    subcat_emb = subcat_table[subcat_ids]         # (B, H, E)  pass-through

    # --- Glue: 'same' padding along tokens (PyTorch: left pad = (W-1)//2) ---
    pad_l = (W - 1) // 2
    pad_r = (W - 1) - pad_l
    emb_pad = jnp.pad(word_emb, ((0, 0), (0, 0), (pad_l, pad_r), (0, 0)))
    emb_pad = emb_pad.astype(compute_dtype)       # (B, H, Lp, E)

    # --- Lane-pad the conv output channels in the weights (zero-cost dense stores) ---
    convw_p = jnp.pad(convw, ((0, 0), (0, 0), (0, CP - C))).astype(compute_dtype)
    convb_p = jnp.pad(convb, ((0, 0), (0, CP - C)))            # stays f32
    pw_p = jnp.pad(pw, ((0, CP - C), (0, 0))).astype(compute_dtype)

    kernel = functools.partial(article_encoder_kernel, H=H, L=L, W=W, E=E, CP=CP,
                               approx_recip=approx_recip)

    M = H * L
    itemsize = jnp.dtype(compute_dtype).itemsize
    cost = pl.CostEstimate(
        flops=int(B * (2 * M * E * CP * W + 2 * M * CP * E + 4 * M * CP)),
        transcendentals=int(B * (M * E + M)),
        bytes_accessed=int(emb_pad.size * itemsize + mask.size * 4
                           + convw_p.size * itemsize + convb_p.size * 4
                           + pw_p.size * itemsize + pb.size * 4 + ctx.size * 4
                           + B * H * CP * 4))

    art_padded = pl.pallas_call(
        kernel,
        out_shape=jax.ShapeDtypeStruct((B, H, CP), jnp.float32),
        grid=(B,),                                # one batch element per step
        in_specs=[
            pl.BlockSpec((1, H, Lp, E), lambda b: (b, 0, 0, 0)),
            pl.BlockSpec((1, H, L), lambda b: (b, 0, 0)),
            pl.BlockSpec((W, E, CP), lambda b: (0, 0, 0)),
            pl.BlockSpec((1, CP), lambda b: (0, 0)),
            pl.BlockSpec((CP, E), lambda b: (0, 0)),
            pl.BlockSpec((1, E), lambda b: (0, 0)),
            pl.BlockSpec((1, E), lambda b: (0, 0)),
        ],
        out_specs=pl.BlockSpec((1, H, CP), lambda b: (b, 0, 0)),
        compiler_params=pltpu.CompilerParams(
            dimension_semantics=("parallel",),
            vmem_limit_bytes=32 * 1024 * 1024),
        cost_estimate=cost,
    )(emb_pad, mask, convw_p, convb_p, pw_p, pb, ctx)

    # --- Glue: slice off lane padding, concat pass-through cat/subcat embeddings ---
    art = art_padded[..., :C]                     # (B, H, C)
    return jnp.concatenate([art, cat_emb, subcat_emb], axis=-1)


def reference_forward(ids, cat_ids, subcat_ids, mask,
                      word_table, cat_table, subcat_table,
                      convw, convb, pw, pb, ctx, *, window_size):
    """Pure-JAX mirror of the PyTorch forward for verification."""
    B, H, L, _ = ids.shape
    C = convw.shape[-1]
    W = window_size
    word_emb = word_table[ids[..., 0]]
    cat_emb = cat_table[cat_ids]
    subcat_emb = subcat_table[subcat_ids]
    pad_l = (W - 1) // 2
    pad_r = (W - 1) - pad_l
    xp = jnp.pad(word_emb, ((0, 0), (0, 0), (pad_l, pad_r), (0, 0)))
    acc = jnp.zeros((B, H, L, C), jnp.float32)
    for w in range(W):
        acc = acc + jnp.einsum('bhle,ec->bhlc', xp[:, :, w:w + L, :], convw[w])
    conv = jnp.maximum(acc + convb[0], 0.0)
    proj = jnp.tanh(jnp.einsum('bhlc,ce->bhle', conv, pw) + pb[0])
    scores = jnp.sum(proj * ctx[0], axis=-1)               # (B, H, L)
    scores = jnp.where(mask > 0.5, scores, -1000000000.0)
    attn = jax.nn.softmax(scores, axis=1)                  # over history axis (dim=1)
    weighted = jnp.sum(conv * attn[..., None], axis=2)
    art = jnp.maximum(weighted, 0.0)
    return jnp.concatenate([art, cat_emb, subcat_emb], axis=-1)


if __name__ == "__main__":
    B, H, L = 2, 8, 16           # batch, history_length, article_token_length
    E, C, W = 32, 32, 3          # embedding_size, cnn_output_size, window_size
    word_vocab, cat_vocab, subcat_vocab = 50, 10, 12

    key = jax.random.PRNGKey(0)
    ks = jax.random.split(key, 12)

    # Deterministic synthetic parameters (shapes as in the PyTorch __init__).
    # TODO(synk): GloVe file loading replaced by deterministic random embeddings.
    word_table = (jax.random.normal(ks[0], (word_vocab, E), jnp.float32) * 0.6
                  ).at[0].set(0.0)                       # padding_idx=0
    cat_table = (jax.random.normal(ks[1], (cat_vocab, E), jnp.float32) * 0.1
                 ).at[0].set(0.0)
    subcat_table = (jax.random.normal(ks[2], (subcat_vocab, E), jnp.float32) * 0.1
                    ).at[0].set(0.0)

    conv_weight = jax.random.normal(ks[3], (C, E, W), jnp.float32) / math.sqrt(E * W)
    convw = jnp.transpose(conv_weight, (2, 1, 0))        # (W, E, C) per-tap matrices
    convb = jax.random.normal(ks[4], (1, C), jnp.float32) * 0.01

    proj_weight = jax.random.normal(ks[5], (E, C), jnp.float32) / math.sqrt(C)  # torch (out,in)
    pw = proj_weight.T                                    # (C, E) for x @ W^T
    pb = jax.random.normal(ks[6], (1, E), jnp.float32) * 0.01
    ctx = jax.random.normal(ks[7], (1, E), jnp.float32) / math.sqrt(E)          # Linear(E,1,no bias)

    # Deterministic inputs.
    ids = jax.random.randint(ks[8], (B, H, L, 1), 1, word_vocab, dtype=jnp.int32)
    ids = ids.at[:, :, L - 4:, :].set(0)                  # padded tail tokens
    cat_ids = jax.random.randint(ks[9], (B, H), 1, cat_vocab, dtype=jnp.int32)
    subcat_ids = jax.random.randint(ks[10], (B, H), 1, subcat_vocab, dtype=jnp.int32)
    mask = (ids[..., 0] != 0).astype(jnp.float32)         # (B, H, L)

    ref = reference_forward(ids, cat_ids, subcat_ids, mask,
                            word_table, cat_table, subcat_table,
                            convw, convb, pw, pb, ctx, window_size=W)
    ref = jax.block_until_ready(ref)

    # 1) Strict validation: f32 operands + exact softmax division.
    out_f32 = article_encoder_forward(ids, cat_ids, subcat_ids, mask,
                                      word_table, cat_table, subcat_table,
                                      convw, convb, pw, pb, ctx,
                                      window_size=W, compute_dtype=jnp.float32,
                                      approx_recip=False)
    out_f32 = jax.block_until_ready(out_f32)
    assert out_f32.shape == (B, H, C + 2 * E), out_f32.shape
    err_f32 = float(jnp.max(jnp.abs(out_f32 - ref)))
    if not np.isfinite(err_f32) or err_f32 > 1e-2:
        raise AssertionError(f"f32 kernel mismatch, max abs err = {err_f32}")

    # 2) Default fast path: bf16 MXU operands + approximate reciprocal.
    out_bf16 = article_encoder_forward(ids, cat_ids, subcat_ids, mask,
                                       word_table, cat_table, subcat_table,
                                       convw, convb, pw, pb, ctx,
                                       window_size=W)     # bf16 + approx defaults
    out_bf16 = jax.block_until_ready(out_bf16)
    assert out_bf16.shape == (B, H, C + 2 * E), out_bf16.shape
    err_bf16 = float(jnp.max(jnp.abs(out_bf16 - ref)))
    if not np.isfinite(err_bf16) or err_bf16 > 5e-2:
        raise AssertionError(f"bf16 kernel mismatch, max abs err = {err_bf16}")

    print("KERNEL_OK")
</pallas_src>

<mosaic_0001>
module attributes {stable_mosaic.version = 11 : i64} {
  func.func @article_encoder_kernel(%arg0: i32, %arg1: memref<1x8x18x32xf32, #tpu.memory_space<vmem>>, %arg2: memref<1x8x16xf32, #tpu.memory_space<vmem>>, %arg3: memref<3x32x128xf32, #tpu.memory_space<vmem>>, %arg4: memref<1x128xf32, #tpu.memory_space<vmem>>, %arg5: memref<128x32xf32, #tpu.memory_space<vmem>>, %arg6: memref<1x32xf32, #tpu.memory_space<vmem>>, %arg7: memref<1x32xf32, #tpu.memory_space<vmem>>, %arg8: memref<1x8x128xf32, #tpu.memory_space<vmem>>) attributes {dimension_semantics = [#tpu.dimension_semantics<parallel>], iteration_bounds = array<i64: 2>, scalar_prefetch = 0 : i64, scratch_operands = 0 : i64, tpu.core_type = #tpu.core_type<tc>, window_params = [{transform_indices = @transform_0, window_bounds = array<i64: 1, 8, 18, 32>}, {transform_indices = @transform_1, window_bounds = array<i64: 1, 8, 16>}, {pipeline_mode = #tpu.pipeline_mode<synchronous>, transform_indices = @transform_2, window_bounds = array<i64: 3, 32, 128>}, {pipeline_mode = #tpu.pipeline_mode<synchronous>, transform_indices = @transform_3, window_bounds = array<i64: 1, 128>}, {pipeline_mode = #tpu.pipeline_mode<synchronous>, transform_indices = @transform_4, window_bounds = array<i64: 128, 32>}, {pipeline_mode = #tpu.pipeline_mode<synchronous>, transform_indices = @transform_5, window_bounds = array<i64: 1, 32>}, {pipeline_mode = #tpu.pipeline_mode<synchronous>, transform_indices = @transform_6, window_bounds = array<i64: 1, 32>}, {transform_indices = @transform_7, window_bounds = array<i64: 1, 8, 128>}]} {
    %c0 = arith.constant 0 : index
    %c0_0 = arith.constant 0 : index
    %c0_1 = arith.constant 0 : index
    %c0_2 = arith.constant 0 : index
    %0 = vector.load %arg1[%c0, %c0_0, %c0_1, %c0_2] : memref<1x8x18x32xf32, #tpu.memory_space<vmem>>, vector<1x8x18x32xf32>
    %1 = vector.shape_cast %0 : vector<1x8x18x32xf32> to vector<8x18x32xf32>
    %cst = arith.constant 0.000000e+00 : f32
    %2 = vector.broadcast %cst : f32 to vector<128x128xf32>
    %3 = vector.extract_strided_slice %1 {offsets = [0, 0, 0], sizes = [8, 16, 32], strides = [1, 1, 1]} : vector<8x18x32xf32> to vector<8x16x32xf32>
    %4 = vector.shape_cast %3 : vector<8x16x32xf32> to vector<128x32xf32>
    %c0_3 = arith.constant 0 : index
    %c0_4 = arith.constant 0 : index
    %c0_5 = arith.constant 0 : index
    %5 = vector.load %arg3[%c0_3, %c0_4, %c0_5] : memref<3x32x128xf32, #tpu.memory_space<vmem>>, vector<1x32x128xf32>
    %6 = vector.shape_cast %5 : vector<1x32x128xf32> to vector<32x128xf32>
    %cst_6 = arith.constant dense<0.000000e+00> : vector<128x128xf32>
    %7 = tpu.matmul %4, %6, %cst_6 {dimension_numbers = #tpu.dot_dimension_numbers<[1], [0], [0], [1], [0, 0, 1, 1], [], []>} : vector<128x32xf32>, vector<32x128xf32>, vector<128x128xf32> -> vector<128x128xf32>
    %8 = arith.addf %2, %7 : vector<128x128xf32>
    %9 = vector.extract_strided_slice %1 {offsets = [0, 1, 0], sizes = [8, 16, 32], strides = [1, 1, 1]} : vector<8x18x32xf32> to vector<8x16x32xf32>
    %10 = vector.shape_cast %9 : vector<8x16x32xf32> to vector<128x32xf32>
    %c1 = arith.constant 1 : index
    %c0_7 = arith.constant 0 : index
    %c0_8 = arith.constant 0 : index
    %11 = vector.load %arg3[%c1, %c0_7, %c0_8] : memref<3x32x128xf32, #tpu.memory_space<vmem>>, vector<1x32x128xf32>
    %12 = vector.shape_cast %11 : vector<1x32x128xf32> to vector<32x128xf32>
    %cst_9 = arith.constant dense<0.000000e+00> : vector<128x128xf32>
    %13 = tpu.matmul %10, %12, %cst_9 {dimension_numbers = #tpu.dot_dimension_numbers<[1], [0], [0], [1], [0, 0, 1, 1], [], []>} : vector<128x32xf32>, vector<32x128xf32>, vector<128x128xf32> -> vector<128x128xf32>
    %14 = arith.addf %8, %13 : vector<128x128xf32>
    %15 = vector.extract_strided_slice %1 {offsets = [0, 2, 0], sizes = [8, 16, 32], strides = [1, 1, 1]} : vector<8x18x32xf32> to vector<8x16x32xf32>
    %16 = vector.shape_cast %15 : vector<8x16x32xf32> to vector<128x32xf32>
    %c2 = arith.constant 2 : index
    %c0_10 = arith.constant 0 : index
    %c0_11 = arith.constant 0 : index
    %17 = vector.load %arg3[%c2, %c0_10, %c0_11] : memref<3x32x128xf32, #tpu.memory_space<vmem>>, vector<1x32x128xf32>
    %18 = vector.shape_cast %17 : vector<1x32x128xf32> to vector<32x128xf32>
    %cst_12 = arith.constant dense<0.000000e+00> : vector<128x128xf32>
    %19 = tpu.matmul %16, %18, %cst_12 {dimension_numbers = #tpu.dot_dimension_numbers<[1], [0], [0], [1], [0, 0, 1, 1], [], []>} : vector<128x32xf32>, vector<32x128xf32>, vector<128x128xf32> -> vector<128x128xf32>
    %20 = arith.addf %14, %19 : vector<128x128xf32>
    %c0_13 = arith.constant 0 : index
    %c0_14 = arith.constant 0 : index
    %21 = vector.load %arg4[%c0_13, %c0_14] : memref<1x128xf32, #tpu.memory_space<vmem>>, vector<1x128xf32>
    %22 = vector.shape_cast %21 : vector<1x128xf32> to vector<128xf32>
    %23 = vector.shape_cast %22 : vector<128xf32> to vector<1x128xf32>
    %24 = vector.broadcast %23 : vector<1x128xf32> to vector<128x128xf32>
    %25 = arith.addf %20, %24 : vector<128x128xf32>
    %cst_15 = arith.constant 0.000000e+00 : f32
    %26 = vector.broadcast %cst_15 : f32 to vector<128x128xf32>
    %27 = arith.maximumf %25, %26 : vector<128x128xf32>
    %c0_16 = arith.constant 0 : index
    %c0_17 = arith.constant 0 : index
    %28 = vector.load %arg5[%c0_16, %c0_17] : memref<128x32xf32, #tpu.memory_space<vmem>>, vector<128x32xf32>
    %cst_18 = arith.constant dense<0.000000e+00> : vector<128x32xf32>
    %29 = tpu.matmul %27, %28, %cst_18 {dimension_numbers = #tpu.dot_dimension_numbers<[1], [0], [0], [1], [0, 0, 1, 1], [], []>} : vector<128x128xf32>, vector<128x32xf32>, vector<128x32xf32> -> vector<128x32xf32>
    %c0_19 = arith.constant 0 : index
    %c0_20 = arith.constant 0 : index
    %30 = vector.load %arg6[%c0_19, %c0_20] : memref<1x32xf32, #tpu.memory_space<vmem>>, vector<1x32xf32>
    %31 = vector.shape_cast %30 : vector<1x32xf32> to vector<32xf32>
    %32 = vector.shape_cast %31 : vector<32xf32> to vector<1x32xf32>
    %33 = vector.broadcast %32 : vector<1x32xf32> to vector<128x32xf32>
    %34 = arith.addf %29, %33 : vector<128x32xf32>
    %35 = math.tanh %34 : vector<128x32xf32>
    %c0_21 = arith.constant 0 : index
    %c0_22 = arith.constant 0 : index
    %36 = vector.load %arg7[%c0_21, %c0_22] : memref<1x32xf32, #tpu.memory_space<vmem>>, vector<1x32xf32>
    %37 = vector.broadcast %36 : vector<1x32xf32> to vector<128x32xf32>
    %38 = arith.mulf %35, %37 : vector<128x32xf32>
    %cst_23 = arith.constant dense<0.000000e+00> : vector<128xf32>
    %39 = vector.multi_reduction <add>, %38, %cst_23 [1] : vector<128x32xf32> to vector<128xf32>
    %40 = vector.shape_cast %39 : vector<128xf32> to vector<8x16xf32>
    %c0_24 = arith.constant 0 : index
    %c0_25 = arith.constant 0 : index
    %c0_26 = arith.constant 0 : index
    %41 = vector.load %arg2[%c0_24, %c0_25, %c0_26] : memref<1x8x16xf32, #tpu.memory_space<vmem>>, vector<1x8x16xf32>
    %42 = vector.shape_cast %41 : vector<1x8x16xf32> to vector<8x16xf32>
    %cst_27 = arith.constant 5.000000e-01 : f32
    %43 = vector.broadcast %cst_27 : f32 to vector<8x16xf32>
    %44 = arith.cmpf ogt, %42, %43 : vector<8x16xf32>
    %cst_28 = arith.constant -1.000000e+09 : f32
    %45 = vector.broadcast %cst_28 : f32 to vector<8x16xf32>
    %46 = arith.select %44, %40, %45 : vector<8x16xi1>, vector<8x16xf32>
    %cst_29 = arith.constant dense<0xFF800000> : vector<16xf32>
    %47 = vector.multi_reduction <maximumf>, %46, %cst_29 [0] : vector<8x16xf32> to vector<16xf32>
    %48 = vector.shape_cast %47 : vector<16xf32> to vector<1x16xf32>
    %49 = vector.broadcast %48 : vector<1x16xf32> to vector<8x16xf32>
    %50 = arith.subf %46, %49 : vector<8x16xf32>
    %51 = math.exp %50 : vector<8x16xf32>
    %cst_30 = arith.constant dense<0.000000e+00> : vector<16xf32>
    %52 = vector.multi_reduction <add>, %51, %cst_30 [0] : vector<8x16xf32> to vector<16xf32>
    %53 = vector.shape_cast %52 : vector<16xf32> to vector<1x16xf32>
    %54 = vector.broadcast %53 : vector<1x16xf32> to vector<8x16xf32>
    %55 = arith.divf %51, %54 : vector<8x16xf32>
    %56 = vector.shape_cast %27 : vector<128x128xf32> to vector<8x16x128xf32>
    %57 = vector.shape_cast %55 : vector<8x16xf32> to vector<8x16x1xf32>
    %58 = vector.broadcast %57 : vector<8x16x1xf32> to vector<8x16x128xf32>
    %59 = arith.mulf %56, %58 : vector<8x16x128xf32>
    %cst_31 = arith.constant dense<0.000000e+00> : vector<8x128xf32>
    %60 = vector.multi_reduction <add>, %59, %cst_31 [1] : vector<8x16x128xf32> to vector<8x128xf32>
    %cst_32 = arith.constant 0.000000e+00 : f32
    %61 = vector.broadcast %cst_32 : f32 to vector<8x128xf32>
    %62 = arith.maximumf %60, %61 : vector<8x128xf32>
    %c0_33 = arith.constant 0 : index
    %c0_34 = arith.constant 0 : index
    %c0_35 = arith.constant 0 : index
    %63 = vector.load %arg8[%c0_33, %c0_34, %c0_35] : memref<1x8x128xf32, #tpu.memory_space<vmem>>, vector<1x8x128xf32>
    %64 = vector.shape_cast %63 : vector<1x8x128xf32> to vector<8x128xf32>
    %65 = vector.shape_cast %62 : vector<8x128xf32> to vector<1x8x128xf32>
    tpu.vector_store %arg8[%c0_33, %c0_34, %c0_35], %65 {strides = array<i32>} : memref<1x8x128xf32, #tpu.memory_space<vmem>>, vector<1x8x128xf32>,
    return
  }
  func.func @transform_0(%arg0: i32) -> (i32, i32, i32, i32) {
    %c0_i32 = arith.constant 0 : i32
    %c0_i32_0 = arith.constant 0 : i32
    %c0_i32_1 = arith.constant 0 : i32
    %c0_i32_2 = arith.constant 0 : i32
    return %arg0, %c0_i32, %c0_i32_0, %c0_i32_1 : i32, i32, i32, i32
  }
  func.func @transform_1(%arg0: i32) -> (i32, i32, i32) {
    %c0_i32 = arith.constant 0 : i32
    %c0_i32_0 = arith.constant 0 : i32
    %c0_i32_1 = arith.constant 0 : i32
    return %arg0, %c0_i32, %c0_i32_0 : i32, i32, i32
  }
  func.func @transform_2(%arg0: i32) -> (i32, i32, i32) {
    %c0_i32 = arith.constant 0 : i32
    %c0_i32_0 = arith.constant 0 : i32
    %c0_i32_1 = arith.constant 0 : i32
    %c0_i32_2 = arith.constant 0 : i32
    return %c0_i32, %c0_i32_0, %c0_i32_1 : i32, i32, i32
  }
  func.func @transform_3(%arg0: i32) -> (i32, i32) {
    %c0_i32 = arith.constant 0 : i32
    %c0_i32_0 = arith.constant 0 : i32
    %c0_i32_1 = arith.constant 0 : i32
    return %c0_i32, %c0_i32_0 : i32, i32
  }
  func.func @transform_4(%arg0: i32) -> (i32, i32) {
    %c0_i32 = arith.constant 0 : i32
    %c0_i32_0 = arith.constant 0 : i32
    %c0_i32_1 = arith.constant 0 : i32
    return %c0_i32, %c0_i32_0 : i32, i32
  }
  func.func @transform_5(%arg0: i32) -> (i32, i32) {
    %c0_i32 = arith.constant 0 : i32
    %c0_i32_0 = arith.constant 0 : i32
    %c0_i32_1 = arith.constant 0 : i32
    return %c0_i32, %c0_i32_0 : i32, i32
  }
  func.func @transform_6(%arg0: i32) -> (i32, i32) {
    %c0_i32 = arith.constant 0 : i32
    %c0_i32_0 = arith.constant 0 : i32
    %c0_i32_1 = arith.constant 0 : i32
    return %c0_i32, %c0_i32_0 : i32, i32
  }
  func.func @transform_7(%arg0: i32) -> (i32, i32, i32) {
    %c0_i32 = arith.constant 0 : i32
    %c0_i32_0 = arith.constant 0 : i32
    %c0_i32_1 = arith.constant 0 : i32
    return %arg0, %c0_i32, %c0_i32_0 : i32, i32, i32
  }
}

</mosaic_0001>

<bundles_post_ra>
// kernel: tpu_custom_call.1
= control target key start
LH: loop header
LB: loop body
LE: loop exit
PB: predicated region body
PF: predicated region fallthrough
CT: control target
= control target key end

     0   :  { %12 = vsyncpa [#allocation3], 0  ;;  %s2901_s0 = inlined_call_operand.vmem [shape: f32[2,8,18,32], index: 0, kind: input, shape index: {}]   ;;  %s2902_s1 = inlined_call_operand.vmem [shape: f32[2,8,16], index: 1, kind: input, shape index: {}]   ;;  %s2903_s2 = inlined_call_operand.vmem [shape: f32[3,32,128], index: 2, kind: input, shape index: {}]   ;;  %s2904_s3 = inlined_call_operand.vmem [shape: f32[1,128], index: 3, kind: input, shape index: {}]   ;;  %s2905_s4 = inlined_call_operand.vmem [shape: f32[128,32], index: 4, kind: input, shape index: {}]   ;;  %s2906_s5 = inlined_call_operand.vmem [shape: f32[1,32], index: 5, kind: input, shape index: {}]   ;;  %s2907_s6 = inlined_call_operand.vmem [shape: f32[1,32], index: 6, kind: input, shape index: {}]   ;;  %s2908_s7 = inlined_call_operand.hbm [shape: f32[2,8,128], index: 7, kind: output, shape index: {}]  }
   0x1   :  { %14 = vsyncpa [#allocation3 + $0x1], 0  ;;  %s2263_s24 = smov 0   ;;  %s2265_s25 = smov 0  }
   0x2   :  { %s2267_s26 = smov 0   ;;  %s2269_s27 = smov 0  }
   0x3 LB: > { %s2284_s28 = sadd.s32 4294967295, %s2220_s27   ;;  %s1680_s29 = sadd.s32 4294967294, %s2220_s27   ;;  %s2220_s27 = sphi %s2269_s27, %s2914_s27   ;;  %s2216_s26 = sphi %s2267_s26, %s2913_s26   ;;  %s2212_s25 = sphi %s2265_s25, %s2912_s25   ;;  %s2208_s24 = sphi %s2263_s24, %s2911_s24  }
   0x4   : > { %s2288_s30 = sadd.s32 1, %s2220_s27   ;;  %s184_s8 = sadd.s32 1, %s2216_s26 }
   0x5   : > { %s181_s9 = ssub.s32 %s2220_s27, %s2288_s30  ;;  %p194_p0 = scmp.ne.s32.totalorder %s2216_s26, %s2212_s25 }
   0x6   : > { %p182_p1 = scmp.eq.s32.totalorder %s181_s9, 0  ;;  %p195_p2 = scmp.eq.s32.totalorder %s2284_s28, 1 }
   0x7   : > { %p200_p3 = scmp.ne.s32.totalorder %s2212_s25, %s2208_s24  ;;  %p201_p4 = scmp.eq.s32.totalorder %s1680_s29, 1 }
   0x8   : > { %s2299_s10 = scalar_select %p182_p1, %s2216_s26, %s184_s8  }
   0x9   : > { %p2301_p5 = por %p195_p2, %p194_p0  ;;  %p2305_p6 = por %p201_p4, %p200_p3 }
   0xa   : > { %p1683_p7 = scmp.ge.s32.totalorder %s2220_s27, 1  ;;  %p249_p8 = scmp.lt.s32.totalorder %s2220_s27, 3 }
   0xc   : > { %p250_p9 = pnand %p1683_p7, %p249_p8 }
   0xd   : > { %v318_v0 = vld [vmem:[%s2903_s2] sm:$0xff] (!%p250_p9)  ;;  %v319_v1 = vld [vmem:[%s2903_s2 + $0x8] sm:$0xff] (!%p250_p9)  ;;  %v320_v2 = vld [vmem:[%s2903_s2 + $0x10] sm:$0xff] (!%p250_p9)  ;;  %p285_p10 = scmp.lt.s32.totalorder (!%p250_p9), %s2284_s28, 1  ;;  %vm392_vm0 = vcmask (!%p250_p9), 261120   ;;  %vm346_vm1 = vcmask (!%p250_p9), 1046528  }
   0xe   : > { %253 = sbr.rel (%p250_p9) target bundleno = 923 (0x39b), region = 48  ;;  %v2002_v3 = vpack.c.bf16 (!%p250_p9), %v319_v1, %v318_v0  ;;  %v321_v4 = vld [vmem:[%s2903_s2 + $0x18] sm:$0xff] (!%p250_p9)  ;;  %v1723_v6 = vld [vmem:[%s2903_s2 + $0x40] sm:$0xff] (!%p250_p9)  ;;  %v1724_v7 = vld [vmem:[%s2903_s2 + $0x48] sm:$0xff] (!%p250_p9)  ;;  %vm747_vm2 = vcmask (!%p250_p9), 1045504   ;;  %vm1309_vm3 = vcmask (!%p250_p9), 130112  }
   0xf   : > { %v2006_v5 = vpack.c.bf16 (!%p250_p9), %v321_v4, %v320_v2  ;;  %v1687_v8 = vld [vmem:[%s2903_s2 + $0x20] sm:$0xff] (!%p250_p9)  ;;  %v1688_v9 = vld [vmem:[%s2903_s2 + $0x28] sm:$0xff] (!%p250_p9)  ;;  %v1689_v10 = vld [vmem:[%s2903_s2 + $0x30] sm:$0xff] (!%p250_p9)  ;;  %v2010_v13 = vpack.c.bf16 (!%p250_p9), %v1724_v7, %v1723_v6  ;;  %vm1374_vm4 = vcmask (!%p250_p9), 1041409   ;;  %vm1376_vm5 = vcmask (!%p250_p9), 1042434  }
  0x10   : > { %2003 = vmatprep.subr.bf16.mxu0 (!%p250_p9), %v2002_v3  ;;  %v1690_v11 = vld [vmem:[%s2903_s2 + $0x38] sm:$0xff] (!%p250_p9)  ;;  %v1994_v12 = vpack.c.bf16 (!%p250_p9), %v1688_v9, %v1687_v8  ;;  %v1725_v14 = vld [vmem:[%s2903_s2 + $0x50] sm:$0xff] (!%p250_p9)  ;;  %v1025_v17 = vld [vmem:[%s2905_s4] sm:$0xff] (!%p250_p9)  ;;  %vm1378_vm6 = vcmask (!%p250_p9), 1043459   ;;  %vm1380_vm7 = vcmask (!%p250_p9), 1044484   ;;  %vm1382_vm8 = vcmask (!%p250_p9), 1045509  }
  0x11   : > { %2005 = vmatpush3.bf16.msra.mxu0 (!%p250_p9), %v2002_v3  ;;  %v1998_v15 = vpack.c.bf16 (!%p250_p9), %v1690_v11, %v1689_v10  ;;  %v1726_v16 = vld [vmem:[%s2903_s2 + $0x58] sm:$0xff] (!%p250_p9)  ;;  %v1026_v18 = vld [vmem:[%s2905_s4 + $0x8] sm:$0xff] (!%p250_p9)  ;;  %v1027_v31 = vld [vmem:[%s2905_s4 + $0x10] sm:$0xff] (!%p250_p9)  ;;  %vm1384_vm9 = vcmask (!%p250_p9), 1046534   ;;  %vm1386_vm10 = vcmask (!%p250_p9), 1047559   ;;  %vm1390_vm12 = vcmask (!%p250_p9), 130048  }
  0x12   : > { %2007 = vmatprep.subr.bf16.mxu0 (!%p250_p9), %v2006_v5  ;;  %1995 = vmatprep.subr.bf16.mxu1 (!%p250_p9), %v1994_v12  ;;  %v2014_v22 = vpack.c.bf16 (!%p250_p9), %v1726_v16, %v1725_v14  ;;  %v2018_v23 = vpack.c.bf16 (!%p250_p9), %v1026_v18, %v1025_v17  ;;  %v1028_v32 = vld [vmem:[%s2905_s4 + $0x18] sm:$0xff] (!%p250_p9)  ;;  %v1029_v45 = vld [vmem:[%s2905_s4 + $0x20] sm:$0xff] (!%p250_p9)  ;;  %v1030_v46 = vld [vmem:[%s2905_s4 + $0x28] sm:$0xff] (!%p250_p9) }
  0x13   : > { %1997 = vmatpush3.bf16.msra.mxu1 (!%p250_p9), %v1994_v12  ;;  %v2022_v44 = vpack.c.bf16 (!%p250_p9), %v1028_v32, %v1027_v31  ;;  %v2026_v55 = vpack.c.bf16 (!%p250_p9), %v1030_v46, %v1029_v45  ;;  %v1031_v56 = vld [vmem:[%s2905_s4 + $0x30] sm:$0xff] (!%p250_p9)  ;;  %v1032_v57 = vld [vmem:[%s2905_s4 + $0x38] sm:$0xff] (!%p250_p9)  ;;  %v1033_v3 = vld [vmem:[%s2905_s4 + $0x40] sm:$0xff] (!%p250_p9) }
  0x14   : > { %1999 = vmatprep.subr.bf16.mxu1 (!%p250_p9), %v1998_v15  ;;  %v2030_v2 = vpack.c.bf16 (!%p250_p9), %v1032_v57, %v1031_v56  ;;  %v1034_v4 = vld [vmem:[%s2905_s4 + $0x48] sm:$0xff] (!%p250_p9)  ;;  %v1035_v14 = vld [vmem:[%s2905_s4 + $0x50] sm:$0xff] (!%p250_p9) }
  0x15   : > { %s2325_s21 = scalar_select %p285_p10, %s2284_s28, 1  ;;  %2009 = vmatpush3.bf16.msra.mxu0 %v2006_v5 }
  0x16   : > { %2011 = vmatprep.subr.bf16.mxu0 %v2010_v13 }
  0x17   : > { %s2082_s20 = smul.u32 192, %s2325_s21  ;;  %2001 = vmatpush3.bf16.msra.mxu1 %v1998_v15  ;;  %v1036_v15 = vld [vmem:[%s2905_s4 + $0x58] sm:$0xff]  ;;  %s1686_s15 = sshll.u32 %s2325_s21, 3 }
  0x18   : > { %2019 = vmatprep.subr.bf16.mxu1 %v2018_v23  ;;  %v2038_v31 = vpack.c.bf16 %v1036_v15, %v1035_v14  ;;  %v1039_v15 = vld [vmem:[%s2905_s4 + $0x70] sm:$0xff]  ;;  %s293_s18 = scalar_lea.vmem %s2902_s1, %s1686_s15  ;;  %s282_s21 = sand.u32 1, %s2212_s25  }
  0x19   : > { %s2352_s9 = scalar_lea.vmem %s2901_s0, %s2082_s20  ;;  %s1684_s19 = sshll.u32 %s282_s21, 3 }
  0x1a   : > { %v2364_v19 = vld [vmem:[%s2352_s9] sm:$0xff]  ;;  %v2369_v20 = vld [vmem:[%s2352_s9 + $0x8] sm:$0xff]  ;;  %v2372_v21 = vld [vmem:[%s2352_s9 + $0x18] sm:$0xff]  ;;  %s1747_s20 = sshll.u32 %s2284_s28, 7  ;;  %s284_s22 = scalar_lea.vmem [#allocation2], %s1684_s19 }
  0x1b   : > { %1882 = vmatprep.mubr.msk.f32.mxu0 %vm392_vm0, %v2364_v19  ;;  %v2379_v24 = vld [vmem:[%s2352_s9 + $0x20] sm:$0xff]  ;;  %v347_v25 = vrot.slane %v2364_v19, 1  ;;  %v352_v26 = vrot.slane %v2372_v21, 1  ;;  %v2385_v28 = vld [vmem:[%s2352_s9 + $0x30] sm:$0xff]  ;;  %v348_v29 = vrot.slane %v2369_v20, 1  ;;  %v2403_v34 = vld [vmem:[%s2352_s9 + $0x38] sm:$0xff]  ;;  %s2856_s13 = scalar_lea.hbm %s2908_s7, %s1747_s20 }
  0x1c   : > { %1883 = vmatmul.mubr.msk.f32.vlgmr.msra.gmra.mrb[0].mxu0 %vm392_vm0, %v2369_v20  ;;  %v353_v27 = vrot.slane %v2379_v24, 1  ;;  %v2391_v30 = vld [vmem:[%s2352_s9 + $0x10] sm:$0x3]  ;;  %v357_v33 = vrot.slane %v2385_v28, 1  ;;  %v2407_v36 = vld [vmem:[%s2352_s9 + $0x28] sm:$0x3] }
  0x1d   : > { %2013 = vmatpush3.bf16.msra.mxu0 %v2010_v13  ;;  %1885 = vmatprep.mubr.msk.f32.mxu0 %vm392_vm0, %v2372_v21  ;;  %v350_v35 = vrot.slane %v2391_v30, 1  ;;  %v358_v37 = vrot.slane %v2403_v34, 1  ;;  %v2411_v38 = vld [vmem:[%s2352_s9 + $0x48] sm:$0xff]  ;;  %v349_v39 = vsel %vm346_vm1, %v347_v25, %v348_v29  ;;  %v355_v41 = vrot.slane %v2407_v36, 1  ;;  %v2417_v42 = vld [vmem:[%s2352_s9 + $0x40] sm:$0x3] }
  0x1e   : > { %2015 = vmatprep.subr.bf16.mxu0 %v2014_v22  ;;  %v354_v40 = vsel %vm346_vm1, %v352_v26, %v353_v27  ;;  %1850 = vmatprep.mubr.msk.f32.mxu1 %vm392_vm0, %v349_v39  ;;  %v2433_v47 = vld [vmem:[%s2352_s9 + $0x50] sm:$0xff]  ;;  %v360_v49 = vrot.slane %v2417_v42, 1  ;;  %v362_v50 = vrot.slane %v2411_v38, 1  ;;  %v2441_v52 = vld [vmem:[%s2352_s9 + $0x60] sm:$0xff]  ;;  %v2445_v54 = vld [vmem:[%s2352_s9 + $0x58] sm:$0x3]  ;;  %v2034_v13 = vpack.c.bf16 %v1034_v4, %v1033_v3 }
  0x1f   : > { %v351_v43 = vsel %vm346_vm1, %v348_v29, %v350_v35  ;;  %v356_v48 = vsel %vm346_vm1, %v353_v27, %v355_v41  ;;  %v363_v51 = vrot.slane %v2433_v47, 1  ;;  %v359_v53 = vsel %vm346_vm1, %v357_v33, %v358_v37  ;;  %v2459_v58 = vld [vmem:[%s2352_s9 + $0x68] sm:$0xff]  ;;  %v2467_v63 = vld [vmem:[%s2352_s9 + $0x78] sm:$0xff]  ;;  %v2471_v1 = vld [vmem:[%s2352_s9 + $0x70] sm:$0x3]  ;;  %s1609_s23 = sshll.u32 %s284_s22, 4  ;;  %s2858_s23 = int_to_ptr.vmem [resolvable:$true] %s1609_s23 }
  0x20   : > { %1886 = vmatmul.mubr.msk.f32.gmra.mrb[2].mxu0 %vm392_vm0, %v2379_v24  ;;  %1851 = vmatmul.mubr.msk.f32.vlgmr.msra.gmra.mrb[0].mxu1 %vm392_vm0, %v351_v43  ;;  %v361_v59 = vsel %vm346_vm1, %v358_v37, %v360_v49  ;;  %v365_v60 = vrot.slane %v2445_v54, 1  ;;  %v367_v61 = vrot.slane %v2441_v52, 1  ;;  %v368_v62 = vrot.slane %v2459_v58, 1  ;;  %v2485_v5 = vld [vmem:[%s2352_s9 + $0x80] sm:$0xff]  ;;  %v2493_v10 = vld [vmem:[%s2352_s9 + $0x90] sm:$0xff]  ;;  %v2512_v17 = vld [vmem:[%s2352_s9 + $0x98] sm:$0xff] }
  0x21   : > { %1888 = vmatprep.mubr.msk.f32.mxu0 %vm392_vm0, %v2385_v28  ;;  %2017 = vmatpush3.bf16.msra.mxu0 %v2014_v22  ;;  %v364_v0 = vsel %vm346_vm1, %v362_v50, %v363_v51  ;;  %v370_v7 = vrot.slane %v2471_v1, 1  ;;  %v372_v8 = vrot.slane %v2467_v63, 1  ;;  %v373_v9 = vrot.slane %v2485_v5, 1  ;;  %v2497_v12 = vld [vmem:[%s2352_s9 + $0x88] sm:$0x3]  ;;  %v2535_v33 = vld [vmem:[%s2352_s9 + $0xb0] sm:$0xff] }
  0x22   : > { %1853 = vmatprep.mubr.msk.f32.mxu1 %vm392_vm0, %v354_v40  ;;  %2021 = vmatpush3.bf16.msra.mxu1 %v2018_v23  ;;  %v366_v6 = vsel %vm346_vm1, %v363_v51, %v365_v60  ;;  %v369_v11 = vsel %vm346_vm1, %v367_v61, %v368_v62  ;;  %v748_v16 = vrot.slane %v2364_v19, 2  ;;  %v375_v22 = vrot.slane %v2497_v12, 1  ;;  %v2521_v27 = vld [vmem:[%s2352_s9 + $0xa8] sm:$0xff]  ;;  %v2525_v29 = vld [vmem:[%s2352_s9 + $0xa0] sm:$0x3]  ;;  %s1596_s28 = scalar_lea.sflag [#allocation3], %s282_s21 }
  0x23   : > { %2023 = vmatprep.subr.bf16.mxu1 %v2022_v44  ;;  %v371_v18 = vsel %vm346_vm1, %v368_v62, %v370_v7  ;;  %v749_v23 = vrot.slane %v2369_v20, 2  ;;  %v377_v25 = vrot.slane %v2493_v10, 1  ;;  %v378_v26 = vrot.slane %v2512_v17, 1  ;;  %v2546_v43 = vld [vmem:[%s2352_s9 + $0xb8] sm:$0x3]  ;;  %s2158_s14 = scalar_lea.vmem %s2858_s23, 128 }
  0x24   : > { %1889 = vmatmul.mubr.msk.f32.gmra.mrb[4].mxu0 %vm392_vm0, %v2403_v34  ;;  %1854 = vmatmul.mubr.msk.f32.gmra.mrb[2].mxu1 %vm392_vm0, %v356_v48  ;;  %v374_v19 = vsel %vm346_vm1, %v372_v8, %v373_v9  ;;  %v753_v32 = vrot.slane %v2372_v21, 2  ;;  %v754_v20 = vrot.slane %v2379_v24, 2  ;;  %v751_v35 = vrot.slane %v2391_v30, 2  ;;  %p2159_p11 = scmp.ne.s32.totalorder %s2858_s23, %s2158_s14  ;;  %s2222_s9 = smov [#allocation2]  }
  0x25   : > { %1891 = vmatprep.mubr.msk.f32.mxu0 %vm392_vm0, %v2411_v38  ;;  %1856 = vmatprep.mubr.msk.f32.mxu1 %vm392_vm0, %v359_v53  ;;  %v376_v37 = vsel %vm346_vm1, %v373_v9, %v375_v22  ;;  %v380_v21 = vrot.slane %v2525_v29, 1  ;;  %v382_v39 = vrot.slane %v2521_v27, 1  ;;  %v383_v40 = vrot.slane %v2535_v33, 1  ;;  %s2162_s15 = sshll.u32 %s2222_s9, 4  ;;  %s2163_s15 = int_to_ptr.vmem [resolvable:$false] %s2162_s15 }
  0x26   : > { %2025 = vmatpush3.bf16.msra.mxu1 %v2022_v44  ;;  %v750_v41 = vsel %vm747_vm2, %v748_v16, %v749_v23  ;;  %v379_v24 = vsel %vm346_vm1, %v377_v25, %v378_v26  ;;  %v752_v30 = vsel %vm747_vm2, %v749_v23, %v751_v35  ;;  %v756_v44 = vrot.slane %v2407_v36, 2  ;;  %v1040_v16 = vld [vmem:[%s2905_s4 + $0x78] sm:$0xff]  ;;  %p2160_p12 = pnand %p2159_p11, %p2301_p5  ;;  %s2164_s16 = scalar_lea.vmem %s2163_s15, 256 }
  0x27   : > { %2027 = vmatprep.subr.bf16.mxu1 %v2026_v55  ;;  %v381_v45 = vsel %vm346_vm1, %v378_v26, %v380_v21  ;;  %v385_v46 = vrot.slane %v2546_v43, 1  ;;  %v758_v48 = vrot.slane %v2385_v28, 2  ;;  %v759_v49 = vrot.slane %v2403_v34, 2  ;;  %p2165_p0 = scmp.lt.s32.totalorder %s2858_s23, %s2163_s15  ;;  %p2166_p1 = scmp.lt.s32.totalorder %s2164_s16, %s2158_s14 }
  0x28   : > { %1892 = vmatmul.mubr.msk.f32.gmra.mrb[6].mxu0 %vm392_vm0, %v2433_v47  ;;  %1857 = vmatmul.mubr.msk.f32.gmra.mrb[4].mxu1 %vm392_vm0, %v361_v59  ;;  %v755_v50 = vsel %vm747_vm2, %v753_v32, %v754_v20  ;;  %v384_v51 = vsel %vm346_vm1, %v382_v39, %v383_v40  ;;  %v757_v36 = vsel %vm747_vm2, %v754_v20, %v756_v44  ;;  %v761_v53 = vrot.slane %v2417_v42, 2  ;;  %p2161_p13 = pneg %p2160_p12 }
  0x29   : > { %1894 = vmatprep.mubr.msk.f32.mxu0 %vm392_vm0, %v2441_v52  ;;  %1859 = vmatprep.mubr.msk.f32.mxu1 %vm392_vm0, %v364_v0  ;;  %v386_v28 = vsel %vm346_vm1, %v383_v40, %v385_v46  ;;  %v763_v34 = vrot.slane %v2411_v38, 2  ;;  %v760_v56 = vsel %vm747_vm2, %v758_v48, %v759_v49  ;;  %v766_v42 = vrot.slane %v2445_v54, 2  ;;  %p2167_p2 = por %p2166_p1, %p2165_p0 }
  0x2a   : > { %2029 = vmatpush3.bf16.msra.mxu1 %v2026_v55  ;;  %v764_v55 = vrot.slane %v2433_v47, 2  ;;  %v762_v57 = vsel %vm747_vm2, %v759_v49, %v761_v53  ;;  %v768_v59 = vrot.slane %v2441_v52, 2  ;;  %v769_v60 = vrot.slane %v2459_v58, 2 }
  0x2b   : > { %2031 = vmatprep.subr.bf16.mxu1 %v2030_v2  ;;  %v771_v61 = vrot.slane %v2471_v1, 2  ;;  %v773_v62 = vrot.slane %v2467_v63, 2  ;;  %v774_v0 = vrot.slane %v2485_v5, 2  ;;  %v779_v3 = vrot.slane %v2512_v17, 2  ;;  %p2168_p3 = pnand %p2167_p2, %p2161_p13 }
  0x2c   : > { %1895 = vmatmul.mubr.msk.f32.gmra.mrb[8].mxu0 %vm392_vm0, %v2459_v58  ;;  %1860 = vmatmul.mubr.msk.f32.gmra.mrb[6].mxu1 %vm392_vm0, %v366_v6  ;;  %v765_v38 = vsel %vm747_vm2, %v763_v34, %v764_v55  ;;  %v767_v47 = vsel %vm747_vm2, %v764_v55, %v766_v42  ;;  %v770_v54 = vsel %vm747_vm2, %v768_v59, %v769_v60  ;;  %v776_v58 = vrot.slane %v2497_v12, 2  ;;  %v1037_v12 = vld [vmem:[%s2905_s4 + $0x60] sm:$0xff] }
  0x2d   : > { %1897 = vmatprep.mubr.msk.f32.mxu0 %vm392_vm0, %v2467_v63  ;;  %1862 = vmatprep.mubr.msk.f32.mxu1 %vm392_vm0, %v369_v11  ;;  %v772_v52 = vsel %vm747_vm2, %v769_v60, %v771_v61  ;;  %v775_v1 = vsel %vm747_vm2, %v773_v62, %v774_v0  ;;  %v781_v4 = vrot.slane %v2525_v29, 2  ;;  %v784_v6 = vrot.slane %v2535_v33, 2 }
  0x2e   : > { %2033 = vmatpush3.bf16.msra.mxu1 %v2030_v2  ;;  %v778_v2 = vrot.slane %v2493_v10, 2  ;;  %v777_v63 = vsel %vm747_vm2, %v774_v0, %v776_v58  ;;  %v786_v9 = vrot.slane %v2546_v43, 2 }
  0x2f   : > { %2035 = vmatprep.subr.bf16.mxu1 %v2034_v13  ;;  %v782_v8 = vsel %vm747_vm2, %v779_v3, %v781_v4 }
  0x30   : > { %1898 = vmatmul.mubr.msk.f32.gmra.mrb[10].mxu0 %vm392_vm0, %v2485_v5  ;;  %1863 = vmatmul.mubr.msk.f32.gmra.mrb[8].mxu1 %vm392_vm0, %v371_v18  ;;  %v783_v5 = vrot.slane %v2521_v27, 2  ;;  %v780_v7 = vsel %vm747_vm2, %v778_v2, %v779_v3  ;;  %v787_v11 = vsel %vm747_vm2, %v784_v6, %v786_v9 }
  0x31   : > { %1900 = vmatprep.mubr.msk.f32.mxu0 %vm392_vm0, %v2493_v10  ;;  %1865 = vmatprep.mubr.msk.f32.mxu1 %vm392_vm0, %v374_v19 }
  0x32   : > { %2037 = vmatpush3.bf16.msra.mxu1 %v2034_v13  ;;  %v785_v10 = vsel %vm747_vm2, %v783_v5, %v784_v6  ;;  %v1038_v13 = vld [vmem:[%s2905_s4 + $0x68] sm:$0xff] }
  0x33   : > { %2039 = vmatprep.subr.bf16.mxu1 %v2038_v31  ;;  %v2042_v14 = vpack.c.bf16 %v1038_v13, %v1037_v12 }
  0x34   : > { %1901 = vmatmul.mubr.msk.f32.gmra.mrb[12].mxu0 %vm392_vm0, %v2512_v17  ;;  %1866 = vmatmul.mubr.msk.f32.gmra.mrb[10].mxu1 %vm392_vm0, %v376_v37  ;;  %v2046_v17 = vpack.c.bf16 %v1040_v16, %v1039_v15  ;;  %v2624_v37 = vld [vmem:[%s2904_s3] ss:$0 sm:$0xff] }
  0x35   : > { %1903 = vmatprep.mubr.msk.f32.mxu0 %vm392_vm0, %v2521_v27  ;;  %1868 = vmatprep.mubr.msk.f32.mxu1 %vm392_vm0, %v379_v24 }
  0x36   : > { %2041 = vmatpush3.bf16.msra.mxu1 %v2038_v31 }
  0x37   : > { %2043 = vmatprep.subr.bf16.mxu1 %v2042_v14 }
  0x38   : > { %1904 = vmatmul.mubr.msk.f32.gmra.mrb[14].mxu0 %vm392_vm0, %v2535_v33  ;;  %1869 = vmatmul.mubr.msk.f32.gmra.mrb[12].mxu1 %vm392_vm0, %v381_v45 }
  0x39   : > { %1914 = vmatprep.mubr.msk.f32.mxu0 %vm392_vm0, %v750_v41  ;;  %1871 = vmatprep.mubr.msk.f32.mxu1 %vm392_vm0, %v384_v51 }
  0x3a   : > { %2045 = vmatpush3.bf16.msra.mxu1 %v2042_v14 }
  0x3b   : > { %2047 = vmatprep.subr.bf16.mxu1 %v2046_v17 }
  0x3c   : > { %1915 = vmatmul.mubr.msk.f32.vlgmr.msra.gmra.mrb[0].mxu0 %vm392_vm0, %v752_v30  ;;  %1872 = vmatmul.mubr.msk.f32.gmra.mrb[14].mxu1 %vm392_vm0, %v386_v28 }
  0x3d   : > { %1917 = vmatprep.mubr.msk.f32.mxu0 %vm392_vm0, %v755_v50 }
  0x3e   : > { %2049 = vmatpush3.bf16.msra.mxu1 %v2046_v17 }
  0x40   : > { %1918 = vmatmul.mubr.msk.f32.gmra.mrb[2].mxu0 %vm392_vm0, %v757_v36 }
  0x41   : > { %1920 = vmatprep.mubr.msk.f32.mxu0 %vm392_vm0, %v760_v56 }
  0x44   : > { %1921 = vmatmul.mubr.msk.f32.gmra.mrb[4].mxu0 %vm392_vm0, %v762_v57 }
  0x45   : > { %1923 = vmatprep.mubr.msk.f32.mxu0 %vm392_vm0, %v765_v38 }
  0x48   : > { %1924 = vmatmul.mubr.msk.f32.gmra.mrb[6].mxu0 %vm392_vm0, %v767_v47 }
  0x49   : > { %1926 = vmatprep.mubr.msk.f32.mxu0 %vm392_vm0, %v770_v54 }
  0x4c   : > { %1927 = vmatmul.mubr.msk.f32.gmra.mrb[8].mxu0 %vm392_vm0, %v772_v52 }
  0x4d   : > { %1929 = vmatprep.mubr.msk.f32.mxu0 %vm392_vm0, %v775_v1 }
  0x50   : > { %1930 = vmatmul.mubr.msk.f32.gmra.mrb[10].mxu0 %vm392_vm0, %v777_v63 }
  0x51   : > { %1932 = vmatprep.mubr.msk.f32.mxu0 %vm392_vm0, %v780_v7 }
  0x54   : > { %1933 = vmatmul.mubr.msk.f32.gmra.mrb[12].mxu0 %vm392_vm0, %v782_v8 }
  0x55   : > { %1935 = vmatprep.mubr.msk.f32.mxu0 %vm392_vm0, %v785_v10 }
  0x58   : > { %1936 = vmatmul.mubr.msk.f32.gmra.mrb[14].mxu0 %vm392_vm0, %v787_v11 }
  0xf3   : > { %v1852_v18 = vpop.f32.mrb[0].mxu1 }
  0xf4   : > { %v491_v22 = vpop.f32.mrb[1].mxu1 }
  0xf7   : > { %v1855_v23 = vpop.f32.mrb[2].mxu1 }
  0xf8   : > { %v501_v25 = vpop.f32.mrb[3].mxu1 }
  0xfb   : > { %v1858_v26 = vpop.f32.mrb[4].mxu1 }
  0xfc   : > { %v511_v27 = vpop.f32.mrb[5].mxu1 }
  0xff   : > { %v1861_v19 = vpop.f32.mrb[6].mxu1 }
 0x100   : > { %v521_v29 = vpop.f32.mrb[7].mxu1 }
 0x103   : > { %v1864_v31 = vpop.f32.mrb[8].mxu1 }
 0x104   : > { %v531_v32 = vpop.f32.mrb[9].mxu1 }
 0x107   : > { %v1867_v20 = vpop.f32.mrb[10].mxu1 }
 0x108   : > { %v541_v33 = vpop.f32.mrb[11].mxu1 }
 0x10b   : > { %v1870_v21 = vpop.f32.mrb[12].mxu1 }
 0x10c   : > { %v551_v41 = vpop.f32.mrb[13].mxu1 }
 0x10f   : > { %v1916_v35 = vpop.f32.mrb[0].mxu0  ;;  %v1873_v45 = vpop.f32.mrb[14].mxu1 }
 0x110   : > { %v2050_v39 = vadd.f32 %v1916_v35, %v1852_v18  ;;  %v891_v40 = vpop.f32.mrb[1].mxu0  ;;  %v561_v49 = vpop.f32.mrb[15].mxu1 }
 0x111   : > { %v2051_v24 = vadd.f32 %v891_v40, %v491_v22 }
 0x112   : > { %v2627_v43 = vadd.f32 %v2050_v39, %v2624_v37 }
 0x113   : > { %v2630_v30 = vadd.f32 %v2051_v24, %v2624_v37  ;;  %v1919_v44 = vpop.f32.mrb[2].mxu0 }
 0x114   : > { %v2052_v46 = vadd.f32 %v1919_v44, %v1855_v23  ;;  %v901_v48 = vpop.f32.mrb[3].mxu0  ;;  %v1010_v36 = vmax.f32 %v2627_v43, 0.0 }
 0x115   : > { %v1009_v50 = vmax.f32 %v2630_v30, 0.0  ;;  %v2053_v51 = vadd.f32 %v901_v48, %v501_v25 }
 0x116   : > { %v2635_v53 = vadd.f32 %v2052_v46, %v2624_v37 }
 0x117   : > { %v2638_v28 = vadd.f32 %v2053_v51, %v2624_v37  ;;  %v1922_v34 = vpop.f32.mrb[4].mxu0  ;;  %1970 = vmatprep.mubr.f32.mxu1 %v1009_v50 }
 0x118   : > { %v2054_v55 = vadd.f32 %v1922_v34, %v1858_v26  ;;  %v911_v56 = vpop.f32.mrb[5].mxu0  ;;  %1971 = vmatmul.mubr.f32.vlgmr.msra.gmra.mrb[16].mxu1 %v1010_v36  ;;  %v1012_v59 = vmax.f32 %v2635_v53, 0.0 }
 0x119   : > { %v1011_v57 = vmax.f32 %v2638_v28, 0.0  ;;  %v2055_v42 = vadd.f32 %v911_v56, %v511_v27 }
 0x11a   : > { %v2647_v60 = vadd.f32 %v2054_v55, %v2624_v37 }
 0x11b   : > { %v2650_v38 = vadd.f32 %v2055_v42, %v2624_v37  ;;  %v1925_v47 = vpop.f32.mrb[6].mxu0  ;;  %1973 = vmatprep.mubr.f32.mxu1 %v1011_v57 }
 0x11c   : > { %v2056_v61 = vadd.f32 %v1925_v47, %v1861_v19  ;;  %v921_v62 = vpop.f32.mrb[7].mxu0  ;;  %1974 = vmatmul.mubr.f32.gmra.mrb[18].mxu1 %v1012_v59  ;;  %v1014_v52 = vmax.f32 %v2647_v60, 0.0 }
 0x11d   : > { %v1013_v0 = vmax.f32 %v2650_v38, 0.0  ;;  %v2057_v54 = vadd.f32 %v921_v62, %v521_v29 }
 0x11e   : > { %v2659_v58 = vadd.f32 %v2056_v61, %v2624_v37  ;;  %v2736_v61 = vld [vmem:[%s2907_s6] ss:$0 sm:$0xff] }
 0x11f   : > { %v2662_v2 = vadd.f32 %v2057_v54, %v2624_v37  ;;  %v1928_v3 = vpop.f32.mrb[8].mxu0  ;;  %1976 = vmatprep.mubr.f32.mxu1 %v1013_v0 }
 0x120   : > { %v2058_v1 = vadd.f32 %v1928_v3, %v1864_v31  ;;  %v931_v63 = vpop.f32.mrb[9].mxu0  ;;  %1977 = vmatmul.mubr.f32.gmra.mrb[20].mxu1 %v1014_v52  ;;  %v1016_v6 = vmax.f32 %v2659_v58, 0.0 }
 0x121   : > { %v1015_v4 = vmax.f32 %v2662_v2, 0.0  ;;  %v2059_v5 = vadd.f32 %v931_v63, %v531_v32 }
 0x122   : > { %v2671_v7 = vadd.f32 %v2058_v1, %v2624_v37 }
 0x123   : > { %v2674_v8 = vadd.f32 %v2059_v5, %v2624_v37  ;;  %v1931_v9 = vpop.f32.mrb[10].mxu0  ;;  %1979 = vmatprep.mubr.f32.mxu1 %v1015_v4 }
 0x124   : > { %v2060_v10 = vadd.f32 %v1931_v9, %v1867_v20  ;;  %v941_v11 = vpop.f32.mrb[11].mxu0  ;;  %1980 = vmatmul.mubr.f32.gmra.mrb[22].mxu1 %v1016_v6  ;;  %v1018_v14 = vmax.f32 %v2671_v7, 0.0 }
 0x125   : > { %v1017_v12 = vmax.f32 %v2674_v8, 0.0  ;;  %v2061_v13 = vadd.f32 %v941_v11, %v541_v33 }
 0x126   : > { %v2683_v15 = vadd.f32 %v2060_v10, %v2624_v37 }
 0x127   : > { %v2686_v16 = vadd.f32 %v2061_v13, %v2624_v37  ;;  %v1934_v17 = vpop.f32.mrb[12].mxu0  ;;  %1982 = vmatprep.mubr.f32.mxu1 %v1017_v12 }
 0x128   : > { %v2062_v18 = vadd.f32 %v1934_v17, %v1870_v21  ;;  %v951_v22 = vpop.f32.mrb[13].mxu0  ;;  %1983 = vmatmul.mubr.f32.gmra.mrb[24].mxu1 %v1018_v14  ;;  %v1020_v26 = vmax.f32 %v2683_v15, 0.0 }
 0x129   : > { %v1019_v23 = vmax.f32 %v2686_v16, 0.0  ;;  %v2063_v25 = vadd.f32 %v951_v22, %v551_v41 }
 0x12a   : > { %v2695_v27 = vadd.f32 %v2062_v18, %v2624_v37 }
 0x12b   : > { %v2698_v19 = vadd.f32 %v2063_v25, %v2624_v37  ;;  %v1937_v29 = vpop.f32.mrb[14].mxu0  ;;  %1985 = vmatprep.mubr.f32.mxu1 %v1019_v23 }
 0x12c   : > { %v2064_v31 = vadd.f32 %v1937_v29, %v1873_v45  ;;  %v961_v32 = vpop.f32.mrb[15].mxu0  ;;  %1986 = vmatmul.mubr.f32.gmra.mrb[26].mxu1 %v1020_v26  ;;  %v1022_v35 = vmax.f32 %v2695_v27, 0.0 }
 0x12d   : > { %v1021_v20 = vmax.f32 %v2698_v19, 0.0  ;;  %v2065_v33 = vadd.f32 %v961_v32, %v561_v49 }
 0x12e   : > { %v2707_v21 = vadd.f32 %v2064_v31, %v2624_v37 }
 0x12f   : > { %v2710_v39 = vadd.f32 %v2065_v33, %v2624_v37  ;;  %1988 = vmatprep.mubr.f32.mxu1 %v1021_v20  ;;  %v2725_v37 = vld [vmem:[%s2906_s5] ss:$0 sm:$0xff] }
 0x130   : > { %1989 = vmatmul.mubr.f32.gmra.mrb[28].mxu1 %v1022_v35  ;;  %v1024_v41 = vmax.f32 %v2707_v21, 0.0 }
 0x131   : > { %v1023_v40 = vmax.f32 %v2710_v39, 0.0 }
 0x133   : > { %1991 = vmatprep.mubr.f32.mxu1 %v1023_v40 }
 0x134   : > { %1992 = vmatmul.mubr.f32.gmra.mrb[30].mxu1 %v1024_v41 }
 0x1eb   : > { %v1972_v24 = vpop.f32.mrb[16].mxu1 }
 0x1ec   : > { %v1120_v44 = vadd.f32 %v1972_v24, %v2725_v37  ;;  %v1114_v45 = vpop.f32.mrb[17].mxu1 }
 0x1ed   : > { %v1115_v46 = vadd.f32 %v2725_v37, %v1114_v45 }
 0x1ee   : > { %2122 = vtanh.f32 %v1120_v44 }
 0x1ef   : > { %2124 = vtanh.f32 %v1115_v46  ;;  %v1975_v48 = vpop.f32.mrb[18].mxu1 }
 0x1f0   : > { %v1130_v49 = vadd.f32 %v1975_v48, %v2725_v37  ;;  %v1124_v51 = vpop.f32.mrb[19].mxu1 }
 0x1f1   : > { %v1125_v34 = vadd.f32 %v2725_v37, %v1124_v51 }
 0x1f2   : > { %2126 = vtanh.f32 %v1130_v49 }
 0x1f3   : > { %2128 = vtanh.f32 %v1125_v34  ;;  %v1978_v55 = vpop.f32.mrb[20].mxu1 }
 0x1f4   : > { %v1140_v56 = vadd.f32 %v1978_v55, %v2725_v37  ;;  %v1134_v42 = vpop.f32.mrb[21].mxu1 }
 0x1f5   : > { %v1135_v47 = vadd.f32 %v2725_v37, %v1134_v42 }
 0x1f6   : > { %2130 = vtanh.f32 %v1140_v56 }
 0x1f7   : > { %2132 = vtanh.f32 %v1135_v47  ;;  %v1981_v62 = vpop.f32.mrb[22].mxu1 }
 0x1f8   : > { %v2123_v54 = vpop.eup %2122  ;;  %v1150_v3 = vadd.f32 %v1981_v62, %v2725_v37  ;;  %v1144_v1 = vpop.f32.mrb[23].mxu1 }
 0x1f9   : > { %v2125_v63 = vpop.eup %2124  ;;  %v1145_v5 = vadd.f32 %v2725_v37, %v1144_v1  ;;  %v1217_v9 = vmul.f32 %v2123_v54, %v2736_v61 }
 0x1fa   : > { %2134 = vtanh.f32 %v1150_v3  ;;  %v1216_v13 = vmul.f32 %v2125_v63, %v2736_v61 }
 0x1fb   : > { %2136 = vtanh.f32 %v1145_v5  ;;  %v1984_v10 = vpop.f32.mrb[24].mxu1  ;;  %v1235_v11 = vsel %vm392_vm0, %v1217_v9, 0.0 }
 0x1fc   : > { %v2127_v17 = vpop.eup %2126  ;;  %v1160_v18 = vadd.f32 %v1984_v10, %v2725_v37  ;;  %1236 = vadd.xlane.f32.xlu0 %v1235_v11  ;;  %v1154_v22 = vpop.f32.mrb[25].mxu1  ;;  %v1232_v24 = vsel %vm392_vm0, %v1216_v13, 0.0 }
 0x1fd   : > { %v2129_v25 = vpop.eup %2128  ;;  %v1155_v29 = vadd.f32 %v2725_v37, %v1154_v22  ;;  %v1219_v31 = vmul.f32 %v2127_v17, %v2736_v61 }
 0x1fe   : > { %2138 = vtanh.f32 %v1160_v18  ;;  %v1218_v44 = vmul.f32 %v2129_v25, %v2736_v61 }
 0x1ff   : > { %2140 = vtanh.f32 %v1155_v29  ;;  %v1987_v32 = vpop.f32.mrb[26].mxu1  ;;  %v1241_v33 = vsel %vm392_vm0, %v1219_v31, 0.0 }
 0x200   : > { %v2131_v45 = vpop.eup %2130  ;;  %v1170_v46 = vadd.f32 %v1987_v32, %v2725_v37  ;;  %1242 = vadd.xlane.f32.xlu1 %v1241_v33  ;;  %v1164_v48 = vpop.f32.mrb[27].mxu1  ;;  %1233 = vadd.xlane.f32.xlu0 %v1232_v24  ;;  %v1238_v56 = vsel %vm392_vm0, %v1218_v44, 0.0 }
 0x201   : > { %v2133_v49 = vpop.eup %2132  ;;  %v1165_v51 = vadd.f32 %v2725_v37, %v1164_v48  ;;  %v1221_v42 = vmul.f32 %v2131_v45, %v2736_v61 }
 0x202   : > { %2142 = vtanh.f32 %v1170_v46  ;;  %v1220_v34 = vmul.f32 %v2133_v49, %v2736_v61 }
 0x203   : > { %2144 = vtanh.f32 %v1165_v51  ;;  %v1990_v55 = vpop.f32.mrb[28].mxu1  ;;  %v1247_v10 = vsel %vm392_vm0, %v1221_v42, 0.0 }
 0x204   : > { %v2135_v47 = vpop.eup %2134  ;;  %v1180_v62 = vadd.f32 %v1990_v55, %v2725_v37  ;;  %v1174_v54 = vpop.f32.mrb[29].mxu1  ;;  %1239 = vadd.xlane.f32.xlu1 %v1238_v56  ;;  %v1244_v3 = vsel %vm392_vm0, %v1220_v34, 0.0 }
 0x205   : > { %v2137_v1 = vpop.eup %2136  ;;  %v1175_v63 = vadd.f32 %v2725_v37, %v1174_v54  ;;  %1245 = vadd.xlane.f32.xlu0 %v1244_v3  ;;  %v1223_v11 = vmul.f32 %v2135_v47, %v2736_v61 }
 0x206   : > { %2146 = vtanh.f32 %v1180_v62  ;;  %v1222_v5 = vmul.f32 %v2137_v1, %v2736_v61 }
 0x207   : > { %2148 = vtanh.f32 %v1175_v63  ;;  %v1993_v9 = vpop.f32.mrb[30].mxu1  ;;  %v1253_v32 = vsel %vm392_vm0, %v1223_v11, 0.0 }
 0x208   : > { %v2139_v13 = vpop.eup %2138  ;;  %v1190_v17 = vadd.f32 %v1993_v9, %v2725_v37  ;;  %1248 = vadd.xlane.f32.xlu1 %v1247_v10  ;;  %v1184_v18 = vpop.f32.mrb[31].mxu1  ;;  %v1250_v22 = vsel %vm392_vm0, %v1222_v5, 0.0 }
 0x209   : > { %v2141_v25 = vpop.eup %2140  ;;  %v1185_v29 = vadd.f32 %v2725_v37, %v1184_v18  ;;  %1251 = vadd.xlane.f32.xlu0 %v1250_v22  ;;  %v1225_v33 = vmul.f32 %v2139_v13, %v2736_v61  ;;  %v1298_v22 = vlaneseq }
 0x20a   : > { %2150 = vtanh.f32 %v1190_v17  ;;  %v1224_v31 = vmul.f32 %v2141_v25, %v2736_v61 }
 0x20b   : > { %2152 = vtanh.f32 %v1185_v29  ;;  %v1259_v48 = vsel %vm392_vm0, %v1225_v33, 0.0 }
 0x20c   : > { %v2143_v24 = vpop.eup %2142  ;;  %1254 = vadd.xlane.f32.xlu1 %v1253_v32  ;;  %v1256_v44 = vsel %vm392_vm0, %v1224_v31, 0.0  ;;  %v1299_v31 = vand.u32 127, %v1298_v22 }
 0x20d   : > { %v2145_v45 = vpop.eup %2144  ;;  %1257 = vadd.xlane.f32.xlu0 %v1256_v44  ;;  %v1227_v37 = vmul.f32 %v2143_v24, %v2736_v61 }
 0x20e   : > { %v1226_v46 = vmul.f32 %v2145_v45, %v2736_v61  ;;  %v1304_v24 = vadd.s32 4294967288, %v1299_v31 }
 0x20f   : > { %v1265_v56 = vsel %vm392_vm0, %v1227_v37, 0.0 }
 0x210   : > { %v2147_v49 = vpop.eup %2146  ;;  %1260 = vadd.xlane.f32.xlu1 %v1259_v48  ;;  %v1262_v51 = vsel %vm392_vm0, %v1226_v46, 0.0 }
 0x211   : > { %v2149_v34 = vpop.eup %2148  ;;  %1263 = vadd.xlane.f32.xlu0 %v1262_v51  ;;  %v1229_v42 = vmul.f32 %v2147_v49, %v2736_v61 }
 0x212   : > { %v1228_v55 = vmul.f32 %v2149_v34, %v2736_v61 }
 0x213   : > { %v1271_v1 = vsel %vm392_vm0, %v1229_v42, 0.0 }
 0x214   : > { %v2151_v47 = vpop.eup %2150  ;;  %1266 = vadd.xlane.f32.xlu1 %v1265_v56  ;;  %v1268_v62 = vsel %vm392_vm0, %v1228_v55, 0.0 }
 0x215   : > { %v2153_v54 = vpop.eup %2152  ;;  %1269 = vadd.xlane.f32.xlu0 %v1268_v62  ;;  %v1231_v63 = vmul.f32 %v2151_v47, %v2736_v61 }
 0x216   : > { %v1230_v3 = vmul.f32 %v2153_v54, %v2736_v61  ;;  %v2780_v61 = vshrl.u32 %v1298_v22, 7 }
 0x217   : > { %v1277_v9 = vsel %vm392_vm0, %v1231_v63, 0.0 }
 0x218   : > { %1272 = vadd.xlane.f32.xlu1 %v1271_v1  ;;  %v1274_v5 = vsel %vm392_vm0, %v1230_v3, 0.0  ;;  %v1302_v45 = vsub.s32 %v1299_v31, %v2780_v61  ;;  %v1307_v48 = vsub.s32 %v1304_v24, %v2780_v61  ;;  %v1280_v24 = vld [vmem:[%s293_s18] sm:$0xff] }
 0x219   : > { %1275 = vadd.xlane.f32.xlu0 %v1274_v5  ;;  %vm1281_vm11 = vcmp.gt.f32.partialorder %v1280_v24, 0.5 }
 0x21c   : > { %1278 = vadd.xlane.f32.xlu1 %v1277_v9 }
 0x289   : > { %v1237_v10 = vpop.xlane.xlu0 %1236 }
 0x28a   : > { %v1308_v54 = vrot.slane %v1237_v10, %v1307_v48 }
 0x28d   : > { %v1243_v11 = vpop.xlane.xlu1 %1242  ;;  %v1234_v13 = vpop.xlane.xlu0 %1233 }
 0x28e   : > { %v1318_v34 = vrot.slane %v1243_v11, %v1307_v48  ;;  %v1303_v55 = vrot.slane %v1234_v13, %v1302_v45 }
 0x290   : > { %v1310_v11 = vsel %vm1309_vm3, %v1308_v54, %v1303_v55 }
 0x291   : > { %v1240_v17 = vpop.xlane.xlu1 %1239 }
 0x292   : > { %v1246_v18 = vpop.xlane.xlu0 %1245  ;;  %v1314_v37 = vrot.slane %v1240_v17, %v1302_v45 }
 0x293   : > { %v1323_v47 = vrot.slane %v1246_v18, %v1302_v45 }
 0x294   : > { %v1319_v3 = vsel %vm1309_vm3, %v1318_v34, %v1314_v37 }
 0x295   : > { %v1249_v25 = vpop.xlane.xlu1 %1248  ;;  %v1375_v22 = vsel %vm1374_vm4, %v1319_v3, %v1310_v11 }
 0x296   : > { %v1252_v29 = vpop.xlane.xlu0 %1251  ;;  %v1327_v49 = vrot.slane %v1249_v25, %v1307_v48 }
 0x297   : > { %v1332_v1 = vrot.slane %v1252_v29, %v1302_v45 }
 0x298   : > { %v1328_v5 = vsel %vm1309_vm3, %v1327_v49, %v1323_v47 }
 0x299   : > { %v1255_v32 = vpop.xlane.xlu1 %1254 }
 0x29a   : > { %v1258_v33 = vpop.xlane.xlu0 %1257  ;;  %v1336_v56 = vrot.slane %v1255_v32, %v1307_v48  ;;  %v1377_v32 = vsel %vm1376_vm5, %v1328_v5, %v1375_v22 }
 0x29b   : > { %v1341_v9 = vrot.slane %v1258_v33, %v1302_v45 }
 0x29c   : > { %v1337_v13 = vsel %vm1309_vm3, %v1336_v56, %v1332_v1 }
 0x29d   : > { %v1261_v44 = vpop.xlane.xlu1 %1260 }
 0x29e   : > { %v1264_v46 = vpop.xlane.xlu0 %1263  ;;  %v1345_v62 = vrot.slane %v1261_v44, %v1307_v48  ;;  %v1379_v44 = vsel %vm1378_vm6, %v1337_v13, %v1377_v32  ;;  %v1412_v32 = vsub.s32 0, %v2780_v61 }
 0x29f   : > { %v1350_v18 = vrot.slane %v1264_v46, %v1302_v45 }
 0x2a0   : > { %v1346_v25 = vsel %vm1309_vm3, %v1345_v62, %v1341_v9 }
 0x2a1   : > { %v1267_v51 = vpop.xlane.xlu1 %1266  ;;  %v1381_v49 = vsel %vm1380_vm7, %v1346_v25, %v1379_v44 }
 0x2a2   : > { %v1270_v42 = vpop.xlane.xlu0 %1269  ;;  %v1354_v63 = vrot.slane %v1267_v51, %v1307_v48 }
 0x2a3   : > { %v1359_v29 = vrot.slane %v1270_v42, %v1302_v45 }
 0x2a4   : > { %v1355_v33 = vsel %vm1309_vm3, %v1354_v63, %v1350_v18 }
 0x2a5   : > { %v1273_v17 = vpop.xlane.xlu1 %1272  ;;  %v1383_v55 = vsel %vm1382_vm8, %v1355_v33, %v1381_v49 }
 0x2a6   : > { %v1363_v10 = vrot.slane %v1273_v17, %v1307_v48  ;;  %v1276_v31 = vpop.xlane.xlu0 %1275 }
 0x2a7   : > { %v1368_v51 = vrot.slane %v1276_v31, %v1302_v45 }
 0x2a8   : > { %v1364_v37 = vsel %vm1309_vm3, %v1363_v10, %v1359_v29 }
 0x2a9   : > { %v1279_v46 = vpop.xlane.xlu1 %1278  ;;  %v1385_v56 = vsel %vm1384_vm9, %v1364_v37, %v1383_v55  ;;  %v1423_v37 = vsub.s32 1, %v2780_v61 }
 0x2aa   : > { %v1372_v34 = vrot.slane %v1279_v46, %v1307_v48  ;;  %v1434_v46 = vsub.s32 2, %v2780_v61 }
 0x2ac   : > { %v1373_v42 = vsel %vm1309_vm3, %v1372_v34, %v1368_v51  ;;  %v1445_v34 = vsub.s32 3, %v2780_v61 }
 0x2ad   : > { %v1387_v47 = vsel %vm1386_vm10, %v1373_v42, %v1385_v56  ;;  %v1456_v56 = vsub.s32 4, %v2780_v61 }
 0x2ae   : > { %v1389_v62 = vsel %vm1281_vm11, %v1387_v47, -1e+09  ;;  %v1467_v47 = vsub.s32 5, %v2780_v61 }
 0x2af   : > { %v1391_v54 = vsel %vm1390_vm12, %v1389_v62, -inf }
 0x2b0   : > { %v1392_v3 = vrot.slane %v1391_v54, 4 }
 0x2b2   : > { %v1393_v1 = vmax.f32 %v1391_v54, %v1392_v3  ;;  %v1478_v54 = vsub.s32 6, %v2780_v61 }
 0x2b4   : > { %v1394_v63 = vrot.slane %v1393_v1, 2 }
 0x2b6   : > { %v1395_v5 = vmax.f32 %v1393_v1, %v1394_v63  ;;  %v1489_v1 = vsub.s32 7, %v2780_v61 }
 0x2b8   : > { %v1396_v9 = vrot.slane %v1395_v5, 1 }
 0x2ba   : > { %v1397_v45 = vmax.f32 %v1395_v5, %v1396_v9 }
 0x2bc   : > { %v1398_v17 = vsub.f32 %v1389_v62, %v1397_v45 }
 0x2be   : > { %v1399_v48 = vmul.f32 1.442695, %v1398_v17 }
 0x2c0   : > { %2154 = vpow2.f32 %v1399_v48 }
 0x2ca   : > { %v2155_v11 = vpop.eup %2154 }
 0x2cb   : > { %v1401_v13 = vsel %vm1390_vm12, %v2155_v11, 0.0 }
 0x2cc   : > { %v1402_v18 = vrot.slane %v1401_v13, 4 }
 0x2ce   : > { %v1403_v10 = vadd.f32 %v1402_v18, %v1401_v13 }
 0x2d0   : > { %v1404_v22 = vrot.slane %v1403_v10, 2 }
 0x2d2   : > { %v1405_v25 = vadd.f32 %v1404_v22, %v1403_v10 }
 0x2d4   : > { %v1406_v29 = vrot.slane %v1405_v25, 1 }
 0x2d6   : > { %v1407_v31 = vadd.f32 %v1406_v29, %v1405_v25 }
 0x2d8   : > { %2156 = vrcp.f32 %v1407_v31 }
 0x2e2   : > { %v2157_v33 = vpop.eup %2156 }
 0x2e3   : > { %v1409_v24 = vmul.f32 %v2157_v33, %v2155_v11 }
 0x2e5   : > { %v1413_v44 = vrot.slane %v1409_v24, %v1412_v32  ;;  %v1424_v49 = vrot.slane %v1409_v24, %v1423_v37  ;;  %v1435_v51 = vrot.slane %v1409_v24, %v1434_v46  ;;  %v1446_v55 = vrot.slane %v1409_v24, %v1445_v34 }
 0x2e6   : > { %v1457_v42 = vrot.slane %v1409_v24, %v1456_v56  ;;  %v1468_v62 = vrot.slane %v1409_v24, %v1467_v47  ;;  %v1479_v3 = vrot.slane %v1409_v24, %v1478_v54  ;;  %v1490_v63 = vrot.slane %v1409_v24, %v1489_v1 }
 0x2e7   : > { %1419 = vbcast.lane.b32.xlu1 %v1413_v44, 264  ;;  %1415 = vbcast.lane.b32.xlu0 %v1413_v44, 256 }
 0x2eb   : > { %1426 = vbcast.lane.b32.xlu1 %v1424_v49, 256  ;;  %1437 = vbcast.lane.b32.xlu0 %v1435_v51, 256 }
 0x2ef   : > { %1430 = vbcast.lane.b32.xlu1 %v1424_v49, 264  ;;  %1448 = vbcast.lane.b32.xlu0 %v1446_v55, 256 }
 0x2f3   : > { %1441 = vbcast.lane.b32.xlu1 %v1435_v51, 264  ;;  %1459 = vbcast.lane.b32.xlu0 %v1457_v42, 256 }
 0x2f7   : > { %1452 = vbcast.lane.b32.xlu1 %v1446_v55, 264  ;;  %1470 = vbcast.lane.b32.xlu0 %v1468_v62, 256 }
 0x2fb   : > { %1463 = vbcast.lane.b32.xlu1 %v1457_v42, 264  ;;  %1481 = vbcast.lane.b32.xlu0 %v1479_v3, 256 }
 0x2ff   : > { %1474 = vbcast.lane.b32.xlu1 %v1468_v62, 264  ;;  %1492 = vbcast.lane.b32.xlu0 %v1490_v63, 256 }
 0x303   : > { %1485 = vbcast.lane.b32.xlu1 %v1479_v3, 264 }
 0x307   : > { %1496 = vbcast.lane.b32.xlu1 %v1490_v63, 264 }
 0x359   : > { %v1420_v5 = vpop.permute.xlu1 %1419  ;;  %v1416_v9 = vpop.permute.xlu0 %1415 }
 0x35a   : > { %v1499_v18 = vmul.f32 %v1420_v5, %v1010_v36  ;;  %v1498_v61 = vmul.f32 %v1416_v9, %v1009_v50 }
 0x35c   : > { %v1514_v53 = vadd.f32 %v1499_v18, %v1498_v61 }
 0x35d   : > { %v1427_v45 = vpop.permute.xlu1 %1426  ;;  %v1438_v17 = vpop.permute.xlu0 %1437 }
 0x35e   : > { %v1500_v10 = vmul.f32 %v1427_v45, %v1011_v57  ;;  %v1502_v29 = vmul.f32 %v1438_v17, %v1013_v0  ;;  %v1515_v57 = vrot.slane %v1514_v53, 4 }
 0x360   : > { %v1516_v46 = vadd.f32 %v1515_v57, %v1514_v53 }
 0x361   : > { %v1431_v48 = vpop.permute.xlu1 %1430  ;;  %v1449_v11 = vpop.permute.xlu0 %1448 }
 0x362   : > { %v1501_v13 = vmul.f32 %v1431_v48, %v1012_v59  ;;  %v1504_v30 = vmul.f32 %v1449_v11, %v1015_v4 }
 0x364   : > { %v1521_v31 = vadd.f32 %v1501_v13, %v1500_v10 }
 0x365   : > { %v1442_v22 = vpop.permute.xlu1 %1441  ;;  %v1460_v25 = vpop.permute.xlu0 %1459 }
 0x366   : > { %v1503_v32 = vmul.f32 %v1442_v22, %v1014_v52  ;;  %v1522_v43 = vrot.slane %v1521_v31, 4  ;;  %v1506_v60 = vmul.f32 %v1460_v25, %v1017_v12  ;;  %v1517_v12 = vrot.slane %v1516_v46, 2 }
 0x368   : > { %v1528_v59 = vadd.f32 %v1503_v32, %v1502_v29  ;;  %v1523_v0 = vadd.f32 %v1522_v43, %v1521_v31 }
 0x369   : > { %v1453_v33 = vpop.permute.xlu1 %1452  ;;  %v1471_v28 = vpop.permute.xlu0 %1470 }
 0x36a   : > { %v1505_v50 = vmul.f32 %v1453_v33, %v1016_v6  ;;  %v1529_v36 = vrot.slane %v1528_v59, 4  ;;  %v1524_v6 = vrot.slane %v1523_v0, 2  ;;  %v1508_v55 = vmul.f32 %v1471_v28, %v1019_v23 }
 0x36b   : > { %v1518_v23 = vadd.f32 %v1517_v12, %v1516_v46 }
 0x36c   : > { %v1535_v24 = vadd.f32 %v1505_v50, %v1504_v30  ;;  %v1530_v37 = vadd.f32 %v1529_v36, %v1528_v59  ;;  %v1525_v47 = vadd.f32 %v1524_v6, %v1523_v0 }
 0x36d   : > { %v1464_v38 = vpop.permute.xlu1 %1463  ;;  %v1482_v49 = vpop.permute.xlu0 %1481 }
 0x36e   : > { %v1536_v52 = vrot.slane %v1535_v24, 4  ;;  %v1507_v44 = vmul.f32 %v1464_v38, %v1018_v14  ;;  %v1531_v34 = vrot.slane %v1530_v37, 2  ;;  %v1510_v54 = vmul.f32 %v1482_v49, %v1021_v20 }
 0x36f   : > { %v1526_v17 = vrot.slane %v1525_v47, 1 }
 0x370   : > { %v1537_v2 = vadd.f32 %v1536_v52, %v1535_v24  ;;  %v1542_v4 = vadd.f32 %v1507_v44, %v1506_v60  ;;  %v1532_v1 = vadd.f32 %v1531_v34, %v1530_v37 }
 0x371   : > { %v1475_v58 = vpop.permute.xlu1 %1474  ;;  %v1493_v16 = vpop.permute.xlu0 %1492  ;;  %v1527_v25 = vadd.f32 %v1526_v17, %v1525_v47 }
 0x372   : > { %v1543_v51 = vrot.slane %v1542_v4, 4  ;;  %v1509_v8 = vmul.f32 %v1475_v58, %v1020_v26  ;;  %v1538_v56 = vrot.slane %v1537_v2, 2  ;;  %v1512_v48 = vmul.f32 %v1493_v16, %v1023_v40 }
 0x373   : > { %v1533_v27 = vrot.slane %v1532_v1, 1  ;;  %v1571_v33 = vmax.f32 %v1527_v25, 0.0 }
 0x374   : > { %v1544_v42 = vadd.f32 %v1543_v51, %v1542_v4  ;;  %v1549_v7 = vadd.f32 %v1509_v8, %v1508_v55  ;;  %v1539_v5 = vadd.f32 %v1538_v56, %v1537_v2 }
 0x375   : > { %v1486_v14 = vpop.permute.xlu1 %1485  ;;  %v1534_v32 = vadd.f32 %v1533_v27, %v1532_v1 }
 0x376   : > { %v1545_v62 = vrot.slane %v1544_v42, 2  ;;  %v1511_v3 = vmul.f32 %v1486_v14, %v1022_v35  ;;  %v1550_v63 = vrot.slane %v1549_v7, 4  ;;  %v1519_v35 = vrot.slane %v1518_v23, 1 }
 0x377   : > { %v1540_v13 = vrot.slane %v1539_v5, 1  ;;  %v1572_v36 = vmax.f32 %v1534_v32, 0.0 }
 0x378   : > { %v1556_v15 = vadd.f32 %v1511_v3, %v1510_v54  ;;  %v1546_v26 = vadd.f32 %v1545_v62, %v1544_v42  ;;  %v1551_v9 = vadd.f32 %v1550_v63, %v1549_v7  ;;  %v1520_v40 = vadd.f32 %v1519_v35, %v1518_v23 }
 0x379   : > { %v1497_v45 = vpop.permute.xlu1 %1496  ;;  %v1541_v53 = vadd.f32 %v1540_v13, %v1539_v5 }
 0x37a   : > { %v1557_v11 = vrot.slane %v1556_v15, 4  ;;  %v1513_v19 = vmul.f32 %v1497_v45, %v1024_v41  ;;  %v1552_v20 = vrot.slane %v1551_v9, 2  ;;  %v1547_v10 = vrot.slane %v1546_v26, 1 }
 0x37b   : > { %v1570_v28 = vmax.f32 %v1520_v40, 0.0  ;;  %v1573_v57 = vmax.f32 %v1541_v53, 0.0 }
 0x37c   : > { %v1558_v18 = vadd.f32 %v1557_v11, %v1556_v15  ;;  %v1563_v61 = vadd.f32 %v1513_v19, %v1512_v48  ;;  %v1553_v22 = vadd.f32 %v1552_v20, %v1551_v9  ;;  %v1548_v41 = vadd.f32 %v1547_v10, %v1546_v26 }
 0x37d   : > { %v1586_v60 = vsel %vm1374_vm4, %v1571_v33, %v1570_v28 }
 0x37e   : > { %v1559_v29 = vrot.slane %v1558_v18, 2  ;;  %v1564_v31 = vrot.slane %v1563_v61, 4  ;;  %v1554_v39 = vrot.slane %v1553_v22, 1  ;;  %v1574_v0 = vmax.f32 %v1548_v41, 0.0 }
 0x37f   : > { %v1587_v37 = vsel %vm1376_vm5, %v1572_v36, %v1586_v60 }
 0x380   : > { %v1560_v59 = vadd.f32 %v1559_v29, %v1558_v18  ;;  %v1565_v21 = vadd.f32 %v1564_v31, %v1563_v61  ;;  %v1555_v43 = vadd.f32 %v1554_v39, %v1553_v22  ;;  %v1588_v4 = vsel %vm1378_vm6, %v1573_v57, %v1587_v37 }
 0x381   : > { %v1589_v49 = vsel %vm1380_vm7, %v1574_v0, %v1588_v4 }
 0x382   : > { %v1561_v30 = vrot.slane %v1560_v59, 1  ;;  %v1566_v50 = vrot.slane %v1565_v21, 2  ;;  %v1575_v52 = vmax.f32 %v1555_v43, 0.0 }
 0x384   : > { %v1562_v24 = vadd.f32 %v1561_v30, %v1560_v59  ;;  %v1567_v38 = vadd.f32 %v1566_v50, %v1565_v21  ;;  %v1590_v6 = vsel %vm1382_vm8, %v1575_v52, %v1589_v49 }
 0x386   : > { %v1568_v44 = vrot.slane %v1567_v38, 1  ;;  %v1576_v46 = vmax.f32 %v1562_v24, 0.0 }
 0x388   : > { %v1569_v2 = vadd.f32 %v1568_v44, %v1567_v38  ;;  %v1591_v51 = vsel %vm1384_vm9, %v1576_v46, %v1590_v6 }
 0x38a   : > { %v1577_v58 = vmax.f32 %v1569_v2, 0.0 }
 0x38c   : > { %v1592_v34 = vsel %vm1386_vm10, %v1577_v58, %v1591_v51 }
 0x38d   : > { %1594 = vst [vmem:[%s284_s22] sm:$0xff] %v1592_v34 }
 0x38e   : > { %2171 = shalt.err (!%p2168_p3)
}
 0x38f   : > { %s2172_s17 = scalar_lea.hbm %s2856_s13, 128  ;;  %s2176_s19 = scalar_lea.hbm %s2908_s7, 256 }
 0x390   : > { %p2173_p4 = scmp.ne.s32.totalorder %s2856_s13, %s2172_s17  ;;  %p2177_p9 = scmp.lt.u32.totalorder %s2856_s13, %s2908_s7 }
 0x391   : > { %p2178_p10 = scmp.lt.u32.totalorder %s2176_s19, %s2172_s17  ;;  %p2180_p12 = scmp.lt.u32.totalorder %s2172_s17, %s2856_s13 }
 0x392   : > { %p2174_p7 = pnand %p2173_p4, %p2301_p5 }
 0x393   : > { %p2179_p11 = por %p2178_p10, %p2177_p9 }
 0x394   : > { %p2175_p8 = pneg %p2174_p7 }
 0x395   : > { %p2181_p13 = por %p2180_p12, %p2179_p11 }
 0x397   : > { %p2182_p0 = pnand %p2181_p13, %p2175_p8 }
 0x399   : > { %2185 = shalt.err (!%p2182_p0)
}
 0x39a   : > { %2083 = dma.vmem_to_hbm [thread:$0]  (%p2301_p5), %s2858_s23, 128, %s2856_s13, %s1596_s28  }
 0x39b PF: > { %p2089_p1 = scmp.ge.s32.totalorder %s2220_s27, 2  ;;  %s1621_s29 = sand.u32 1, %s2208_s24  }
 0x39c   : > { %s1622_s8 = scalar_lea.sflag [#allocation3], %s1621_s29 }
 0x39d   : > { %p2086_p2 = pnand %p2089_p1, %p2305_p6 }
 0x39f   : > { %2203 = dma.done.wait (!%p2086_p2), %s1622_s8, 128  }
 0x3a0   : > { %2205 = vsyncadd (!%p2086_p2), %s1622_s8, 4294967168  ;;  %p17_p3 = scmp.ge.s32.totalorder %s2288_s30, 4   ;;  %s2911_s24 = smov %s2212_s25 }
 0x3a1   : > { %s2912_s25 = smov %s2216_s26  ;;  %s2913_s26 = smov %s2299_s10 }
 0x3a2   : > { %s2914_s27 = smov %s2288_s30  ;;  %19 = sbr.rel (!%p17_p3) target bundleno = 3 (0x3), region = 88 }
 0x3a9   :  { %1627 = vsyncpa [#allocation3], 1 }
 0x3aa   :  { %1629 = vsyncpa [#allocation3 + $0x1], 1 }

</bundles_post_ra>
